<compile_context>
chip_gen: v7x
topology: tpu7x:2x2x1
jax: 0.10.0
libtpu: 0.0.40
codegen_flags: <defaults>
</compile_context>

<pallas_src>
import functools

import jax
import jax.numpy as jnp
from jax import lax
from jax.experimental import pallas as pl
from jax.experimental.pallas import tpu as pltpu

_LANES = 128
# Candidate lane-dense widths, widest first: wider last dim -> wider
# contiguous DMA descriptors / unmasked stores and fewer grid steps.
_WIDTH_CANDIDATES = (2048, 1024, 512, 256, 128)
# ~256K elements per tile (~1 MiB f32): past the measured roofline plateau,
# cheap on VMEM even with double buffering and noise temporaries (v7x-safe).
_TARGET_BLOCK_ELEMS = 256 * 1024


def _mix32(v):
    """murmur3 32-bit finalizer (full avalanche), int32 arithmetic mod 2**32."""
    v = v ^ lax.shift_right_logical(v, 16)
    v = v * (-2048144789)        # 0x85ebca6b
    v = v ^ lax.shift_right_logical(v, 13)
    v = v * (-1028477387)        # 0xc2b2ae35
    v = v ^ lax.shift_right_logical(v, 16)
    return v


def _gaussian_dropout_kernel(seed_ref, x_ref, o_ref, *, sigma):
    """out = x * (1 + sigma * z), z ~ N(0, 1) from a counter-based hash."""
    block_rows, lanes = x_ref.shape

    # Unique int32 counter per element of the logical array.  Noise depends
    # only on (seed, global index) -> grid iterations are fully independent
    # ("parallel"-safe) and there is no per-tile seed aliasing across calls.
    base = pl.program_id(0) * (block_rows * lanes)
    row = lax.broadcasted_iota(jnp.int32, (block_rows, lanes), 0)
    col = lax.broadcasted_iota(jnp.int32, (block_rows, lanes), 1)
    idx = base + row * lanes + col

    seed = seed_ref[0]
    # Spread counter + seed bits, then two decorrelated streams via a salt
    # and a full-avalanche finalizer.
    k = (idx * (-1640531527)) ^ (seed * (-1028477387) + 374761393)
    h1 = _mix32(k)
    h2 = _mix32(k ^ 668265263)

    # 24-bit uniforms (exactly representable in f32): u1 in (0, 1], u2 in [0, 1).
    inv24 = jnp.float32(1.0 / (1 << 24))
    u1 = (h1 & 0x00FFFFFF).astype(jnp.float32) * inv24 + jnp.float32(0.5 / (1 << 24))
    u2 = (h2 & 0x00FFFFFF).astype(jnp.float32) * inv24

    # Box-Muller: z = sqrt(-2 ln u1) * cos(pi * (2 u2 - 1)).  cos is an even
    # Taylor polynomial (|err| < 2e-3 on [-pi, pi]) so the kernel only needs
    # VPU mul/add plus EUP log/sqrt (no TPU-specific transcendental support).
    r = jnp.sqrt(-2.0 * jnp.log(u1))
    t = jnp.float32(3.14159265358979) * (2.0 * u2 - 1.0)
    y = t * t
    c = 1.0 + y * (-1.0 / 2 + y * (1.0 / 24 + y * (-1.0 / 720
            + y * (1.0 / 40320 + y * (-1.0 / 3628800)))))
    z = r * c                                   # ~ N(0, 1)

    eps = 1.0 + jnp.float32(sigma) * z          # mean 1, std sigma (module semantics)
    o_ref[...] = (x_ref[...].astype(jnp.float32) * eps).astype(o_ref.dtype)


def _choose_width(n):
    for c in _WIDTH_CANDIDATES:
        if n % c == 0:
            return c
    return None


@functools.partial(jax.jit, static_argnames=("p",))
def gaussian_dropout(x, *, p=0.0, seed=0):
    """Pallas-TPU forward of the PyTorch GaussianDropout module."""
    sigma = float(p) / (1.0 - float(p))
    if sigma == 0.0:
        return x  # eps == 1 exactly when p == 0: skip the noise pass.

    orig_shape = x.shape
    n = x.size

    # Lane-dense 2D view; prefer a width that divides n exactly so no pad /
    # slice copies (extra HBM passes) are needed.
    width = _choose_width(n)
    if width is None:
        width = _LANES
        rows = pl.cdiv(n, width)
        x2d = jnp.pad(x.reshape(-1), (0, rows * width - n)).reshape(rows, width)
        padded = True
    else:
        rows = n // width
        x2d = x.reshape(rows, width)
        padded = False

    # Block sizing: ~_TARGET_BLOCK_ELEMS elements per tile; block rows are a
    # multiple of 8 (or the full row count).  A ragged final block is handled
    # by the cdiv grid (out-of-range rows are never written back).
    target_rows = max(8, _TARGET_BLOCK_ELEMS // width)
    block_rows = rows if rows <= target_rows else (target_rows // 8) * 8
    grid = (pl.cdiv(rows, block_rows),)

    seed_arr = jnp.asarray(seed, dtype=jnp.int32).reshape((1,))

    out2d = pl.pallas_call(
        functools.partial(_gaussian_dropout_kernel, sigma=sigma),
        out_shape=jax.ShapeDtypeStruct((rows, width), x.dtype),
        grid_spec=pltpu.PrefetchScalarGridSpec(
            num_scalar_prefetch=1,
            grid=grid,
            in_specs=[pl.BlockSpec((block_rows, width), lambda i, seed_ref: (i, 0))],
            out_specs=pl.BlockSpec((block_rows, width), lambda i, seed_ref: (i, 0)),
        ),
        # x (call-arg index 1, after the scalar-prefetch seed) aliases output 0:
        # same shape/dtype, purely elementwise -> reuse/donate the HBM buffer.
        input_output_aliases={1: 0},
        compiler_params=pltpu.CompilerParams(
            # No cross-iteration state -> shard the grid over both v7x
            # TensorCores; near-neutral on single-TC v5e/v6e.
            dimension_semantics=("parallel",),
        ),
    )(seed_arr, x2d)

    if padded:
        return out2d.reshape(-1)[:n].reshape(orig_shape)
    return out2d.reshape(orig_shape)


if __name__ == "__main__":
    key = jax.random.PRNGKey(0)
    x = jax.random.normal(key, (2, 4, 16, 16), dtype=jnp.float32)  # NCHW

    p = 0.1                                 # noise std sigma = p / (1 - p)
    sigma = p / (1.0 - p)

    out = jax.block_until_ready(gaussian_dropout(x, p=p, seed=0))
    assert out.shape == x.shape and out.dtype == x.dtype

    # Determinism: same seed -> identical noise.
    out2 = jax.block_until_ready(gaussian_dropout(x, p=p, seed=0))
    assert bool(jnp.all(out == out2))

    # p = 0 -> eps == 1 exactly -> identity.
    out0 = jax.block_until_ready(gaussian_dropout(x, p=0.0, seed=0))
    assert bool(jnp.all(out0 == x))

    # Sanity on the multiplicative noise: eps = out / x should have mean ~1
    # and std ~sigma (module semantics: eps = randn * (p/(1-p)) + 1).
    big = jnp.abs(x) > 1e-3
    eps_est = jnp.where(big, out / jnp.where(big, x, 1.0), 1.0)
    mean_eps = float(jnp.mean(eps_est))
    std_eps = float(jnp.std(eps_est))
    assert abs(mean_eps - 1.0) < 0.02, f"mean(eps)={mean_eps}"
    assert abs(std_eps - sigma) < 0.3 * sigma, f"std(eps)={std_eps} vs sigma={sigma}"

    print("KERNEL_OK")
</pallas_src>

<mosaic_0001>
module attributes {stable_mosaic.version = 11 : i64} {
  func.func @_gaussian_dropout_kernel(%arg0: i32, %arg1: memref<1xi32, #tpu.memory_space<smem>>, %arg2: memref<1x2048xf32, #tpu.memory_space<vmem>>, %arg3: memref<1x2048xf32, #tpu.memory_space<vmem>>) attributes {dimension_semantics = [#tpu.dimension_semantics<parallel>], iteration_bounds = array<i64: 1>, scalar_prefetch = 1 : i64, scratch_operands = 0 : i64, tpu.core_type = #tpu.core_type<tc>, window_params = [{transform_indices = @transform_0, window_bounds = array<i64: 1, 2048>}, {transform_indices = @transform_1, window_bounds = array<i64: 1, 2048>}]} {
    %c2048_i32 = arith.constant 2048 : i32
    %0 = arith.muli %arg0, %c2048_i32 : i32
    %1 = tpu.iota {dimensions = array<i32: 0>} : vector<1x2048xi32>
    %2 = tpu.iota {dimensions = array<i32: 1>} : vector<1x2048xi32>
    %c2048_i32_0 = arith.constant 2048 : i32
    %3 = vector.broadcast %c2048_i32_0 : i32 to vector<1x2048xi32>
    %4 = arith.muli %1, %3 : vector<1x2048xi32>
    %5 = vector.broadcast %0 : i32 to vector<1x2048xi32>
    %6 = arith.addi %5, %4 : vector<1x2048xi32>
    %7 = arith.addi %6, %2 : vector<1x2048xi32>
    %c0 = arith.constant 0 : index
    %8 = memref.load %arg1[%c0] : memref<1xi32, #tpu.memory_space<smem>>
    %c-1640531527_i32 = arith.constant -1640531527 : i32
    %9 = vector.broadcast %c-1640531527_i32 : i32 to vector<1x2048xi32>
    %10 = arith.muli %7, %9 : vector<1x2048xi32>
    %c-1028477387_i32 = arith.constant -1028477387 : i32
    %11 = arith.muli %8, %c-1028477387_i32 : i32
    %c374761393_i32 = arith.constant 374761393 : i32
    %12 = arith.addi %11, %c374761393_i32 : i32
    %13 = vector.broadcast %12 : i32 to vector<1x2048xi32>
    %14 = arith.xori %10, %13 : vector<1x2048xi32>
    %c16_i32 = arith.constant 16 : i32
    %15 = vector.broadcast %c16_i32 : i32 to vector<1x2048xi32>
    %16 = arith.shrui %14, %15 : vector<1x2048xi32>
    %17 = arith.xori %14, %16 : vector<1x2048xi32>
    %c-2048144789_i32 = arith.constant -2048144789 : i32
    %18 = vector.broadcast %c-2048144789_i32 : i32 to vector<1x2048xi32>
    %19 = arith.muli %17, %18 : vector<1x2048xi32>
    %c13_i32 = arith.constant 13 : i32
    %20 = vector.broadcast %c13_i32 : i32 to vector<1x2048xi32>
    %21 = arith.shrui %19, %20 : vector<1x2048xi32>
    %22 = arith.xori %19, %21 : vector<1x2048xi32>
    %c-1028477387_i32_1 = arith.constant -1028477387 : i32
    %23 = vector.broadcast %c-1028477387_i32_1 : i32 to vector<1x2048xi32>
    %24 = arith.muli %22, %23 : vector<1x2048xi32>
    %c16_i32_2 = arith.constant 16 : i32
    %25 = vector.broadcast %c16_i32_2 : i32 to vector<1x2048xi32>
    %26 = arith.shrui %24, %25 : vector<1x2048xi32>
    %27 = arith.xori %24, %26 : vector<1x2048xi32>
    %c668265263_i32 = arith.constant 668265263 : i32
    %28 = vector.broadcast %c668265263_i32 : i32 to vector<1x2048xi32>
    %29 = arith.xori %14, %28 : vector<1x2048xi32>
    %c16_i32_3 = arith.constant 16 : i32
    %30 = vector.broadcast %c16_i32_3 : i32 to vector<1x2048xi32>
    %31 = arith.shrui %29, %30 : vector<1x2048xi32>
    %32 = arith.xori %29, %31 : vector<1x2048xi32>
    %c-2048144789_i32_4 = arith.constant -2048144789 : i32
    %33 = vector.broadcast %c-2048144789_i32_4 : i32 to vector<1x2048xi32>
    %34 = arith.muli %32, %33 : vector<1x2048xi32>
    %c13_i32_5 = arith.constant 13 : i32
    %35 = vector.broadcast %c13_i32_5 : i32 to vector<1x2048xi32>
    %36 = arith.shrui %34, %35 : vector<1x2048xi32>
    %37 = arith.xori %34, %36 : vector<1x2048xi32>
    %c-1028477387_i32_6 = arith.constant -1028477387 : i32
    %38 = vector.broadcast %c-1028477387_i32_6 : i32 to vector<1x2048xi32>
    %39 = arith.muli %37, %38 : vector<1x2048xi32>
    %c16_i32_7 = arith.constant 16 : i32
    %40 = vector.broadcast %c16_i32_7 : i32 to vector<1x2048xi32>
    %41 = arith.shrui %39, %40 : vector<1x2048xi32>
    %42 = arith.xori %39, %41 : vector<1x2048xi32>
    %c16777215_i32 = arith.constant 16777215 : i32
    %43 = vector.broadcast %c16777215_i32 : i32 to vector<1x2048xi32>
    %44 = arith.andi %27, %43 : vector<1x2048xi32>
    %45 = arith.sitofp %44 : vector<1x2048xi32> to vector<1x2048xf32>
    %cst = arith.constant 5.96046448E-8 : f32
    %46 = vector.broadcast %cst : f32 to vector<1x2048xf32>
    %47 = arith.mulf %45, %46 : vector<1x2048xf32>
    %cst_8 = arith.constant 2.98023224E-8 : f32
    %48 = vector.broadcast %cst_8 : f32 to vector<1x2048xf32>
    %49 = arith.addf %47, %48 : vector<1x2048xf32>
    %c16777215_i32_9 = arith.constant 16777215 : i32
    %50 = vector.broadcast %c16777215_i32_9 : i32 to vector<1x2048xi32>
    %51 = arith.andi %42, %50 : vector<1x2048xi32>
    %52 = arith.sitofp %51 : vector<1x2048xi32> to vector<1x2048xf32>
    %cst_10 = arith.constant 5.96046448E-8 : f32
    %53 = vector.broadcast %cst_10 : f32 to vector<1x2048xf32>
    %54 = arith.mulf %52, %53 : vector<1x2048xf32>
    %55 = math.log %49 : vector<1x2048xf32>
    %cst_11 = arith.constant -2.000000e+00 : f32
    %56 = vector.broadcast %cst_11 : f32 to vector<1x2048xf32>
    %57 = arith.mulf %56, %55 : vector<1x2048xf32>
    %58 = math.sqrt %57 : vector<1x2048xf32>
    %cst_12 = arith.constant 2.000000e+00 : f32
    %59 = vector.broadcast %cst_12 : f32 to vector<1x2048xf32>
    %60 = arith.mulf %59, %54 : vector<1x2048xf32>
    %cst_13 = arith.constant 1.000000e+00 : f32
    %61 = vector.broadcast %cst_13 : f32 to vector<1x2048xf32>
    %62 = arith.subf %60, %61 : vector<1x2048xf32>
    %cst_14 = arith.constant 3.14159274 : f32
    %63 = vector.broadcast %cst_14 : f32 to vector<1x2048xf32>
    %64 = arith.mulf %63, %62 : vector<1x2048xf32>
    %65 = arith.mulf %64, %64 : vector<1x2048xf32>
    %cst_15 = arith.constant -2.755732E-7 : f32
    %66 = vector.broadcast %cst_15 : f32 to vector<1x2048xf32>
    %67 = arith.mulf %65, %66 : vector<1x2048xf32>
    %cst_16 = arith.constant 2.48015876E-5 : f32
    %68 = vector.broadcast %cst_16 : f32 to vector<1x2048xf32>
    %69 = arith.addf %68, %67 : vector<1x2048xf32>
    %70 = arith.mulf %65, %69 : vector<1x2048xf32>
    %cst_17 = arith.constant -0.00138888892 : f32
    %71 = vector.broadcast %cst_17 : f32 to vector<1x2048xf32>
    %72 = arith.addf %71, %70 : vector<1x2048xf32>
    %73 = arith.mulf %65, %72 : vector<1x2048xf32>
    %cst_18 = arith.constant 0.0416666679 : f32
    %74 = vector.broadcast %cst_18 : f32 to vector<1x2048xf32>
    %75 = arith.addf %74, %73 : vector<1x2048xf32>
    %76 = arith.mulf %65, %75 : vector<1x2048xf32>
    %cst_19 = arith.constant -5.000000e-01 : f32
    %77 = vector.broadcast %cst_19 : f32 to vector<1x2048xf32>
    %78 = arith.addf %77, %76 : vector<1x2048xf32>
    %79 = arith.mulf %65, %78 : vector<1x2048xf32>
    %cst_20 = arith.constant 1.000000e+00 : f32
    %80 = vector.broadcast %cst_20 : f32 to vector<1x2048xf32>
    %81 = arith.addf %80, %79 : vector<1x2048xf32>
    %82 = arith.mulf %58, %81 : vector<1x2048xf32>
    %cst_21 = arith.constant 0.111111112 : f32
    %83 = vector.broadcast %cst_21 : f32 to vector<1x2048xf32>
    %84 = arith.mulf %83, %82 : vector<1x2048xf32>
    %cst_22 = arith.constant 1.000000e+00 : f32
    %85 = vector.broadcast %cst_22 : f32 to vector<1x2048xf32>
    %86 = arith.addf %85, %84 : vector<1x2048xf32>
    %c0_23 = arith.constant 0 : index
    %c0_24 = arith.constant 0 : index
    %87 = vector.load %arg2[%c0_23, %c0_24] : memref<1x2048xf32, #tpu.memory_space<vmem>>, vector<1x2048xf32>
    %88 = arith.mulf %87, %86 : vector<1x2048xf32>
    %c0_25 = arith.constant 0 : index
    %c0_26 = arith.constant 0 : index
    %89 = vector.load %arg3[%c0_25, %c0_26] : memref<1x2048xf32, #tpu.memory_space<vmem>>, vector<1x2048xf32>
    tpu.vector_store %arg3[%c0_25, %c0_26], %88 {strides = array<i32>} : memref<1x2048xf32, #tpu.memory_space<vmem>>, vector<1x2048xf32>,
    return
  }
  func.func @transform_0(%arg0: i32, %arg1: memref<1xi32, #tpu.memory_space<smem>>) -> (i32, i32) {
    %c0_i32 = arith.constant 0 : i32
    %c0_i32_0 = arith.constant 0 : i32
    return %arg0, %c0_i32 : i32, i32
  }
  func.func @transform_1(%arg0: i32, %arg1: memref<1xi32, #tpu.memory_space<smem>>) -> (i32, i32) {
    %c0_i32 = arith.constant 0 : i32
    %c0_i32_0 = arith.constant 0 : i32
    return %arg0, %c0_i32 : i32, i32
  }
}

</mosaic_0001>

<bundles_post_ra>
// kernel: gaussian_dropout.1
= control target key start
LH: loop header
LB: loop body
LE: loop exit
PB: predicated region body
PF: predicated region fallthrough
CT: control target
= control target key end

     0   :  { %v11_v0 = vlaneseq  ;;  %s1787_s0 = inlined_call_operand.<no memory space> [shape: s32[1], index: 0, kind: input, shape index: {}]   ;;  %s1788_s1 = inlined_call_operand.vmem [shape: f32[1,2048], index: 1, kind: input, shape index: {}, may-alias: {1,2}]   ;;  %s1789_s2 = inlined_call_operand.vmem [shape: f32[1,2048], index: 2, kind: output, shape index: {}, may-alias: {1,2}]  }
   0x1   :  { %s66_s11 = smul.u32 3266489909, %s1787_s0 }
   0x2   :  { %v1124_v1 = vshrl.u32 %v11_v0, 7  ;;  %v14_v2 = vand.u32 127, %v11_v0 }
   0x3   :  { %s67_s12 = sadd.s32 374761393, %s66_s11 }
   0x4   :  { %1792 = vst [vmem:[#allocation4_spill] sm:$0xff] %v1124_v1  ;;  %v15_v3 = vadd.s32 128, %v14_v2  ;;  %v30_v4 = vmul.u32 2048, %v1124_v1  ;;  %v16_v5 = vadd.s32 256, %v14_v2  ;;  %v17_v6 = vadd.s32 384, %v14_v2 }
   0x5   :  { %v18_v7 = vadd.s32 512, %v14_v2  ;;  %v19_v8 = vadd.s32 640, %v14_v2  ;;  %v20_v9 = vadd.s32 768, %v14_v2  ;;  %v21_v10 = vadd.s32 896, %v14_v2 }
   0x6   :  { %v22_v11 = vadd.s32 1024, %v14_v2  ;;  %v23_v12 = vadd.s32 1152, %v14_v2  ;;  %v24_v13 = vadd.s32 1280, %v14_v2  ;;  %v33_v14 = vadd.s32 %v30_v4, %v14_v2 }
   0x7   :  { %v34_v15 = vadd.s32 %v30_v4, %v15_v3  ;;  %v25_v16 = vadd.s32 1408, %v14_v2  ;;  %v26_v17 = vadd.s32 1536, %v14_v2  ;;  %v35_v18 = vadd.s32 %v30_v4, %v16_v5 }
   0x8   :  { %v36_v19 = vadd.s32 %v30_v4, %v17_v6  ;;  %v27_v20 = vadd.s32 1664, %v14_v2  ;;  %v28_v21 = vadd.s32 1792, %v14_v2  ;;  %v37_v22 = vadd.s32 %v30_v4, %v18_v7 }
   0x9   :  { %v38_v23 = vadd.s32 %v30_v4, %v19_v8  ;;  %v29_v24 = vadd.s32 1920, %v14_v2  ;;  %v39_v25 = vadd.s32 %v30_v4, %v20_v9  ;;  %v40_v26 = vadd.s32 %v30_v4, %v21_v10 }
   0xa   :  { %v68_v27 = vstv %s67_s12  ;;  %v41_v28 = vadd.s32 %v30_v4, %v22_v11  ;;  %v42_v29 = vadd.s32 %v30_v4, %v23_v12  ;;  %v50_v30 = vmul.u32 2654435769, %v33_v14 }
   0xb   :  { %v51_v31 = vmul.u32 2654435769, %v34_v15  ;;  %v43_v32 = vadd.s32 %v30_v4, %v24_v13  ;;  %v44_v33 = vadd.s32 %v30_v4, %v25_v16  ;;  %v52_v34 = vmul.u32 2654435769, %v35_v18 }
   0xc   :  { %v53_v35 = vmul.u32 2654435769, %v36_v19  ;;  %v45_v36 = vadd.s32 %v30_v4, %v26_v17  ;;  %v46_v37 = vadd.s32 %v30_v4, %v27_v20  ;;  %v54_v38 = vmul.u32 2654435769, %v37_v22 }
   0xd   :  { %v55_v39 = vmul.u32 2654435769, %v38_v23  ;;  %v47_v40 = vadd.s32 %v30_v4, %v28_v21  ;;  %v48_v41 = vadd.s32 %v30_v4, %v29_v24  ;;  %v56_v42 = vmul.u32 2654435769, %v39_v25 }
   0xe   :  { %v57_v43 = vmul.u32 2654435769, %v40_v26  ;;  %v58_v44 = vmul.u32 2654435769, %v41_v28  ;;  %v1130_v46 = vxor.u32 %v68_v27, %v50_v30  ;;  %v1132_v49 = vxor.u32 %v68_v27, %v51_v31 }
   0xf   :  { %v59_v45 = vmul.u32 2654435769, %v42_v29  ;;  %v60_v47 = vmul.u32 2654435769, %v43_v32  ;;  %v1134_v50 = vxor.u32 %v68_v27, %v52_v34  ;;  %v1136_v53 = vxor.u32 %v68_v27, %v53_v35 }
  0x10   :  { %v61_v48 = vmul.u32 2654435769, %v44_v33  ;;  %v62_v51 = vmul.u32 2654435769, %v45_v36  ;;  %v1138_v54 = vxor.u32 %v68_v27, %v54_v38  ;;  %v1140_v57 = vxor.u32 %v68_v27, %v55_v39 }
  0x11   :  { %v63_v52 = vmul.u32 2654435769, %v46_v37  ;;  %v64_v55 = vmul.u32 2654435769, %v47_v40  ;;  %v1142_v58 = vxor.u32 %v68_v27, %v56_v42  ;;  %v1144_v59 = vxor.u32 %v68_v27, %v57_v43 }
  0x12   :  { %v65_v56 = vmul.u32 2654435769, %v48_v41  ;;  %v1146_v60 = vxor.u32 %v68_v27, %v58_v44  ;;  %v1148_v61 = vxor.u32 %v68_v27, %v59_v45  ;;  %v85_v62 = vshrl.u32 %v1130_v46, 16 }
  0x13   :  { %v1151_v63 = vxor.u32 %v68_v27, %v60_v47  ;;  %v1153_v0 = vxor.u32 %v68_v27, %v61_v48  ;;  %v86_v2 = vshrl.u32 %v1132_v49, 16  ;;  %v87_v3 = vshrl.u32 %v1134_v50, 16 }
  0x14   :  { %v1157_v4 = vxor.u32 %v68_v27, %v62_v51  ;;  %v1159_v5 = vxor.u32 %v68_v27, %v63_v52  ;;  %v88_v6 = vshrl.u32 %v1136_v53, 16  ;;  %v89_v7 = vshrl.u32 %v1138_v54, 16 }
  0x15   :  { %v1163_v8 = vxor.u32 %v68_v27, %v64_v55  ;;  %v1165_v9 = vxor.u32 %v68_v27, %v65_v56  ;;  %v90_v10 = vshrl.u32 %v1140_v57, 16  ;;  %v91_v11 = vshrl.u32 %v1142_v58, 16 }
  0x16   :  { %v92_v12 = vshrl.u32 %v1144_v59, 16  ;;  %v93_v13 = vshrl.u32 %v1146_v60, 16  ;;  %v94_v14 = vshrl.u32 %v1148_v61, 16  ;;  %v101_v15 = vxor.u32 %v85_v62, %v1130_v46 }
  0x17   :  { %v95_v16 = vshrl.u32 %v1151_v63, 16  ;;  %v96_v17 = vshrl.u32 %v1153_v0, 16  ;;  %v102_v18 = vxor.u32 %v86_v2, %v1132_v49  ;;  %v103_v19 = vxor.u32 %v87_v3, %v1134_v50 }
  0x18   :  { %v97_v20 = vshrl.u32 %v1157_v4, 16  ;;  %v98_v21 = vshrl.u32 %v1159_v5, 16  ;;  %v104_v22 = vxor.u32 %v88_v6, %v1136_v53  ;;  %v105_v23 = vxor.u32 %v89_v7, %v1138_v54 }
  0x19   :  { %v99_v24 = vshrl.u32 %v1163_v8, 16  ;;  %v100_v25 = vshrl.u32 %v1165_v9, 16  ;;  %v106_v26 = vxor.u32 %v90_v10, %v1140_v57  ;;  %v107_v27 = vxor.u32 %v91_v11, %v1142_v58 }
  0x1a   :  { %v108_v28 = vxor.u32 %v92_v12, %v1144_v59  ;;  %v109_v29 = vxor.u32 %v93_v13, %v1146_v60  ;;  %v110_v30 = vxor.u32 %v94_v14, %v1148_v61  ;;  %v117_v31 = vmul.u32 2246822507, %v101_v15 }
  0x1b   :  { %v111_v32 = vxor.u32 %v95_v16, %v1151_v63  ;;  %v112_v33 = vxor.u32 %v96_v17, %v1153_v0  ;;  %v118_v34 = vmul.u32 2246822507, %v102_v18  ;;  %v119_v35 = vmul.u32 2246822507, %v103_v19 }
  0x1c   :  { %v113_v36 = vxor.u32 %v97_v20, %v1157_v4  ;;  %v114_v37 = vxor.u32 %v98_v21, %v1159_v5  ;;  %v120_v38 = vmul.u32 2246822507, %v104_v22  ;;  %v121_v39 = vmul.u32 2246822507, %v105_v23 }
  0x1d   :  { %v115_v40 = vxor.u32 %v99_v24, %v1163_v8  ;;  %v122_v41 = vmul.u32 2246822507, %v106_v26  ;;  %v123_v42 = vmul.u32 2246822507, %v107_v27  ;;  %v213_v43 = vxor.u32 668265263, %v1130_v46 }
  0x1e   :  { %v116_v44 = vxor.u32 %v100_v25, %v1165_v9  ;;  %v124_v45 = vmul.u32 2246822507, %v108_v28  ;;  %v125_v47 = vmul.u32 2246822507, %v109_v29  ;;  %v133_v48 = vshrl.u32 %v117_v31, 13 }
  0x1f   :  { %v126_v51 = vmul.u32 2246822507, %v110_v30  ;;  %v127_v52 = vmul.u32 2246822507, %v111_v32  ;;  %v134_v55 = vshrl.u32 %v118_v34, 13  ;;  %v135_v56 = vshrl.u32 %v119_v35, 13 }
  0x20   :  { %v128_v62 = vmul.u32 2246822507, %v112_v33  ;;  %v129_v2 = vmul.u32 2246822507, %v113_v36  ;;  %v136_v3 = vshrl.u32 %v120_v38, 13  ;;  %v137_v6 = vshrl.u32 %v121_v39, 13 }
  0x21   :  { %v130_v7 = vmul.u32 2246822507, %v114_v37  ;;  %v131_v10 = vmul.u32 2246822507, %v115_v40  ;;  %v138_v11 = vshrl.u32 %v122_v41, 13  ;;  %v139_v12 = vshrl.u32 %v123_v42, 13 }
  0x22   :  { %v132_v13 = vmul.u32 2246822507, %v116_v44  ;;  %v140_v14 = vshrl.u32 %v124_v45, 13  ;;  %v141_v15 = vshrl.u32 %v125_v47, 13  ;;  %v149_v16 = vxor.u32 %v133_v48, %v117_v31 }
  0x23   :  { %v142_v17 = vshrl.u32 %v126_v51, 13  ;;  %v143_v18 = vshrl.u32 %v127_v52, 13  ;;  %v150_v19 = vxor.u32 %v134_v55, %v118_v34  ;;  %v151_v20 = vxor.u32 %v135_v56, %v119_v35 }
  0x24   :  { %v144_v21 = vshrl.u32 %v128_v62, 13  ;;  %v145_v22 = vshrl.u32 %v129_v2, 13  ;;  %v152_v23 = vxor.u32 %v136_v3, %v120_v38  ;;  %v153_v24 = vxor.u32 %v137_v6, %v121_v39 }
  0x25   :  { %v146_v25 = vshrl.u32 %v130_v7, 13  ;;  %v147_v26 = vshrl.u32 %v131_v10, 13  ;;  %v154_v27 = vxor.u32 %v138_v11, %v122_v41  ;;  %v155_v28 = vxor.u32 %v139_v12, %v123_v42 }
  0x26   :  { %v148_v29 = vshrl.u32 %v132_v13, 13  ;;  %v156_v30 = vxor.u32 %v140_v14, %v124_v45  ;;  %v157_v32 = vxor.u32 %v141_v15, %v125_v47  ;;  %v165_v33 = vmul.u32 3266489909, %v149_v16 }
  0x27   :  { %v158_v36 = vxor.u32 %v142_v17, %v126_v51  ;;  %v159_v37 = vxor.u32 %v143_v18, %v127_v52  ;;  %v166_v40 = vmul.u32 3266489909, %v150_v19  ;;  %v167_v31 = vmul.u32 3266489909, %v151_v20 }
  0x28   :  { %v160_v44 = vxor.u32 %v144_v21, %v128_v62  ;;  %v161_v48 = vxor.u32 %v145_v22, %v129_v2  ;;  %v168_v34 = vmul.u32 3266489909, %v152_v23  ;;  %v169_v35 = vmul.u32 3266489909, %v153_v24 }
  0x29   :  { %v162_v55 = vxor.u32 %v146_v25, %v130_v7  ;;  %v163_v56 = vxor.u32 %v147_v26, %v131_v10  ;;  %v170_v38 = vmul.u32 3266489909, %v154_v27  ;;  %v171_v39 = vmul.u32 3266489909, %v155_v28 }
  0x2a   :  { %v1195_v3 = vxor.u32 %v148_v29, %v132_v13  ;;  %v172_v41 = vmul.u32 3266489909, %v156_v30  ;;  %v173_v42 = vmul.u32 3266489909, %v157_v32  ;;  %v214_v45 = vxor.u32 668265263, %v1132_v49 }
  0x2b   :  { %v174_v47 = vmul.u32 3266489909, %v158_v36  ;;  %v175_v6 = vmul.u32 3266489909, %v159_v37  ;;  %v215_v51 = vxor.u32 668265263, %v1134_v50 }
  0x2c   :  { %v176_v52 = vmul.u32 3266489909, %v160_v44  ;;  %v177_v11 = vmul.u32 3266489909, %v161_v48  ;;  %v216_v62 = vxor.u32 668265263, %v1136_v53 }
  0x2d   :  { %v178_v2 = vmul.u32 3266489909, %v162_v55  ;;  %v179_v12 = vmul.u32 3266489909, %v163_v56  ;;  %v181_v7 = vshrl.u32 %v165_v33, 16  ;;  %v182_v10 = vshrl.u32 %v166_v40, 16 }
  0x2e   :  { %v1790_v14 = vmul.u32 3266489909, %v1195_v3  ;;  %v183_v13 = vshrl.u32 %v167_v31, 16  ;;  %v184_v15 = vshrl.u32 %v168_v34, 16  ;;  %v185_v16 = vshrl.u32 %v169_v35, 16 }
  0x2f   :  { %v186_v17 = vshrl.u32 %v170_v38, 16  ;;  %v187_v18 = vshrl.u32 %v171_v39, 16  ;;  %v188_v19 = vshrl.u32 %v172_v41, 16  ;;  %v189_v20 = vshrl.u32 %v173_v42, 16 }
  0x30   :  { %v190_v21 = vshrl.u32 %v174_v47, 16  ;;  %v191_v22 = vshrl.u32 %v175_v6, 16  ;;  %v192_v23 = vshrl.u32 %v176_v52, 16  ;;  %v193_v24 = vshrl.u32 %v177_v11, 16 }
  0x31   :  { %v194_v25 = vshrl.u32 %v178_v2, 16  ;;  %v195_v26 = vshrl.u32 %v179_v12, 16  ;;  %v1201_v27 = vxor.u32 %v181_v7, %v165_v33  ;;  %v1203_v28 = vxor.u32 %v182_v10, %v166_v40 }
  0x32   :  { %v1207_v29 = vshrl.u32 %v1790_v14, 16  ;;  %v1209_v30 = vxor.u32 %v183_v13, %v167_v31  ;;  %v1211_v32 = vxor.u32 %v184_v15, %v168_v34  ;;  %v1213_v36 = vxor.u32 %v185_v16, %v169_v35 }
  0x33   :  { %v1215_v37 = vxor.u32 %v186_v17, %v170_v38  ;;  %v1217_v44 = vxor.u32 %v187_v18, %v171_v39  ;;  %v1219_v48 = vxor.u32 %v188_v19, %v172_v41  ;;  %v1221_v33 = vxor.u32 %v189_v20, %v173_v42 }
  0x34   :  { %v1223_v40 = vxor.u32 %v190_v21, %v174_v47  ;;  %v1225_v55 = vxor.u32 %v191_v22, %v175_v6  ;;  %v1227_v56 = vxor.u32 %v192_v23, %v176_v52  ;;  %v1229_v31 = vxor.u32 %v193_v24, %v177_v11 }
  0x35   :  { %v1231_v34 = vxor.u32 %v194_v25, %v178_v2  ;;  %v217_v35 = vxor.u32 668265263, %v1138_v54  ;;  %v218_v38 = vxor.u32 668265263, %v1140_v57  ;;  %v219_v39 = vxor.u32 668265263, %v1142_v58 }
  0x36   :  { %v1236_v41 = vxor.u32 %v195_v26, %v179_v12  ;;  %v220_v42 = vxor.u32 668265263, %v1144_v59  ;;  %v221_v47 = vxor.u32 668265263, %v1146_v60  ;;  %v222_v6 = vxor.u32 668265263, %v1148_v61 }
  0x37   :  { %v223_v52 = vxor.u32 668265263, %v1151_v63  ;;  %v224_v11 = vxor.u32 668265263, %v1153_v0  ;;  %v229_v2 = vshrl.u32 %v213_v43, 16  ;;  %v230_v54 = vshrl.u32 %v214_v45, 16 }
  0x38   :  { %v225_v57 = vxor.u32 668265263, %v1157_v4  ;;  %v226_v58 = vxor.u32 668265263, %v1159_v5  ;;  %v231_v59 = vshrl.u32 %v215_v51, 16  ;;  %v232_v60 = vshrl.u32 %v216_v62, 16 }
  0x39   :  { %v227_v61 = vxor.u32 668265263, %v1163_v8  ;;  %v228_v63 = vxor.u32 668265263, %v1165_v9  ;;  %v233_v0 = vshrl.u32 %v217_v35, 16  ;;  %v234_v12 = vshrl.u32 %v218_v38, 16 }
  0x3a   :  { %v235_v7 = vshrl.u32 %v219_v39, 16  ;;  %v236_v10 = vshrl.u32 %v220_v42, 16  ;;  %v237_v13 = vshrl.u32 %v221_v47, 16  ;;  %v238_v15 = vshrl.u32 %v222_v6, 16 }
  0x3b   :  { %v239_v16 = vshrl.u32 %v223_v52, 16  ;;  %v240_v4 = vshrl.u32 %v224_v11, 16  ;;  %v245_v5 = vxor.u32 %v229_v2, %v213_v43  ;;  %v246_v17 = vxor.u32 %v230_v54, %v214_v45 }
  0x3c   :  { %v241_v18 = vshrl.u32 %v225_v57, 16  ;;  %v242_v19 = vshrl.u32 %v226_v58, 16  ;;  %v247_v8 = vxor.u32 %v231_v59, %v215_v51  ;;  %v248_v9 = vxor.u32 %v232_v60, %v216_v62 }
  0x3d   :  { %v243_v20 = vshrl.u32 %v227_v61, 16  ;;  %v244_v21 = vshrl.u32 %v228_v63, 16  ;;  %v249_v22 = vxor.u32 %v233_v0, %v217_v35  ;;  %v250_v23 = vxor.u32 %v234_v12, %v218_v38 }
  0x3e   :  { %v251_v24 = vxor.u32 %v235_v7, %v219_v39  ;;  %v252_v25 = vxor.u32 %v236_v10, %v220_v42  ;;  %v253_v26 = vxor.u32 %v237_v13, %v221_v47  ;;  %v254_v46 = vxor.u32 %v238_v15, %v222_v6 }
  0x3f   :  { %v255_v43 = vxor.u32 %v239_v16, %v223_v52  ;;  %v256_v2 = vxor.u32 %v240_v4, %v224_v11  ;;  %v261_v49 = vmul.u32 2246822507, %v245_v5  ;;  %v262_v45 = vmul.u32 2246822507, %v246_v17 }
  0x40   :  { %v257_v54 = vxor.u32 %v241_v18, %v225_v57  ;;  %v258_v14 = vxor.u32 %v242_v19, %v226_v58  ;;  %v263_v1 = vmul.u32 2246822507, %v247_v8  ;;  %v264_v50 = vmul.u32 2246822507, %v248_v9 }
  0x41   :  { %v259_v51 = vxor.u32 %v243_v20, %v227_v61  ;;  %v265_v59 = vmul.u32 2246822507, %v249_v22  ;;  %v266_v53 = vmul.u32 2246822507, %v250_v23  ;;  %v357_v62 = vand.u32 16777215, %v1201_v27 }
  0x42   :  { %v260_v60 = vxor.u32 %v244_v21, %v228_v63  ;;  %v267_v35 = vmul.u32 2246822507, %v251_v24  ;;  %v268_v38 = vmul.u32 2246822507, %v252_v25  ;;  %v358_v39 = vand.u32 16777215, %v1203_v28 }
  0x43   :  { %v269_v42 = vmul.u32 2246822507, %v253_v26  ;;  %v270_v47 = vmul.u32 2246822507, %v254_v46  ;;  %v277_v6 = vshrl.u32 %v261_v49, 13  ;;  %v278_v52 = vshrl.u32 %v262_v45, 13 }
  0x44   :  { %v271_v11 = vmul.u32 2246822507, %v255_v43  ;;  %v272_v0 = vmul.u32 2246822507, %v256_v2  ;;  %v279_v57 = vshrl.u32 %v263_v1, 13  ;;  %v280_v58 = vshrl.u32 %v264_v50, 13 }
  0x45   :  { %v273_v12 = vmul.u32 2246822507, %v257_v54  ;;  %v274_v7 = vmul.u32 2246822507, %v258_v14  ;;  %v281_v61 = vshrl.u32 %v265_v59, 13  ;;  %v282_v10 = vshrl.u32 %v266_v53, 13 }
  0x46   :  { %v275_v13 = vmul.u32 2246822507, %v259_v51  ;;  %v276_v15 = vmul.u32 2246822507, %v260_v60  ;;  %v283_v27 = vshrl.u32 %v267_v35, 13  ;;  %v284_v63 = vshrl.u32 %v268_v38, 13 }
  0x47   :  { %v285_v16 = vshrl.u32 %v269_v42, 13  ;;  %v286_v4 = vshrl.u32 %v270_v47, 13  ;;  %v293_v5 = vxor.u32 %v277_v6, %v261_v49  ;;  %v294_v28 = vxor.u32 %v278_v52, %v262_v45 }
  0x48   :  { %v287_v17 = vshrl.u32 %v271_v11, 13  ;;  %v288_v18 = vshrl.u32 %v272_v0, 13  ;;  %v295_v19 = vxor.u32 %v279_v57, %v263_v1  ;;  %v296_v8 = vxor.u32 %v280_v58, %v264_v50 }
  0x49   :  { %v289_v9 = vshrl.u32 %v273_v12, 13  ;;  %v290_v20 = vshrl.u32 %v274_v7, 13  ;;  %v297_v21 = vxor.u32 %v281_v61, %v265_v59  ;;  %v298_v22 = vxor.u32 %v282_v10, %v266_v53 }
  0x4a   :  { %v291_v23 = vshrl.u32 %v275_v13, 13  ;;  %v292_v14 = vshrl.u32 %v276_v15, 13  ;;  %v299_v24 = vxor.u32 %v283_v27, %v267_v35  ;;  %v300_v25 = vxor.u32 %v284_v63, %v268_v38 }
  0x4b   :  { %v301_v26 = vxor.u32 %v285_v16, %v269_v42  ;;  %v302_v46 = vxor.u32 %v286_v4, %v270_v47  ;;  %v309_v43 = vmul.u32 3266489909, %v293_v5  ;;  %v310_v2 = vmul.u32 3266489909, %v294_v28 }
  0x4c   :  { %v303_v54 = vxor.u32 %v287_v17, %v271_v11  ;;  %v304_v51 = vxor.u32 %v288_v18, %v272_v0  ;;  %v311_v49 = vmul.u32 3266489909, %v295_v19  ;;  %v312_v45 = vmul.u32 3266489909, %v296_v8 }
  0x4d   :  { %v305_v60 = vxor.u32 %v289_v9, %v273_v12  ;;  %v306_v6 = vxor.u32 %v290_v20, %v274_v7  ;;  %v313_v1 = vmul.u32 3266489909, %v297_v21  ;;  %v314_v50 = vmul.u32 3266489909, %v298_v22 }
  0x4e   :  { %v307_v52 = vxor.u32 %v291_v23, %v275_v13  ;;  %v308_v57 = vxor.u32 %v292_v14, %v276_v15  ;;  %v315_v59 = vmul.u32 3266489909, %v299_v24  ;;  %v316_v53 = vmul.u32 3266489909, %v300_v25 }
  0x4f   :  { %v1793_v58 = vmul.u32 3266489909, %v1195_v3  ;;  %v317_v38 = vmul.u32 3266489909, %v301_v26  ;;  %v359_v47 = vand.u32 16777215, %v1209_v30  ;;  %v373_v7 = vcvt.s32.f32 %v357_v62 }
  0x50   :  { %v318_v42 = vmul.u32 3266489909, %v302_v46  ;;  %v319_v11 = vmul.u32 3266489909, %v303_v54  ;;  %v360_v12 = vand.u32 16777215, %v1211_v32  ;;  %v374_v15 = vcvt.s32.f32 %v358_v39 }
  0x51   :  { %v1268_v35 = vxor.u32 %v1207_v29, %v1793_v58  ;;  %v320_v0 = vmul.u32 3266489909, %v304_v51  ;;  %v321_v61 = vmul.u32 3266489909, %v305_v60  ;;  %v325_v13 = vshrl.u32 %v309_v43, 16 }
  0x52   :  { %v322_v10 = vmul.u32 3266489909, %v306_v6  ;;  %v323_v27 = vmul.u32 3266489909, %v307_v52  ;;  %v326_v16 = vshrl.u32 %v310_v2, 16  ;;  %v327_v3 = vshrl.u32 %v311_v49, 16 }
  0x53   :  { %v324_v63 = vmul.u32 3266489909, %v308_v57  ;;  %v328_v4 = vshrl.u32 %v312_v45, 16  ;;  %v329_v29 = vshrl.u32 %v313_v1, 16  ;;  %v330_v5 = vshrl.u32 %v314_v50, 16 }
  0x54   :  { %v331_v28 = vshrl.u32 %v315_v59, 16  ;;  %v332_v17 = vshrl.u32 %v316_v53, 16  ;;  %v333_v18 = vshrl.u32 %v317_v38, 16  ;;  %v334_v30 = vshrl.u32 %v318_v42, 16 }
  0x55   :  { %v335_v19 = vshrl.u32 %v319_v11, 16  ;;  %v336_v8 = vshrl.u32 %v320_v0, 16  ;;  %v337_v9 = vshrl.u32 %v321_v61, 16  ;;  %v338_v32 = vshrl.u32 %v322_v10, 16 }
  0x56   :  { %v1272_v62 = vxor.u32 %v325_v13, %v309_v43  ;;  %v339_v20 = vshrl.u32 %v323_v27, 16  ;;  %v340_v21 = vshrl.u32 %v324_v63, 16  ;;  %v1274_v39 = vxor.u32 %v326_v16, %v310_v2 }
  0x57   :  { %v1276_v22 = vxor.u32 %v327_v3, %v311_v49  ;;  %v1278_v23 = vxor.u32 %v328_v4, %v312_v45  ;;  %v1280_v14 = vxor.u32 %v329_v29, %v313_v1  ;;  %v1282_v24 = vxor.u32 %v330_v5, %v314_v50 }
  0x58   :  { %v1284_v25 = vxor.u32 %v331_v28, %v315_v59  ;;  %v1286_v26 = vxor.u32 %v332_v17, %v316_v53  ;;  %v1288_v46 = vxor.u32 %v333_v18, %v317_v38  ;;  %v1290_v43 = vxor.u32 %v334_v30, %v318_v42 }
  0x59   :  { %v1292_v54 = vxor.u32 %v335_v19, %v319_v11  ;;  %v1294_v2 = vxor.u32 %v336_v8, %v320_v0  ;;  %v361_v51 = vand.u32 16777215, %v1213_v36  ;;  %v362_v49 = vand.u32 16777215, %v1215_v37 }
  0x5a   :  { %v363_v45 = vand.u32 16777215, %v1217_v44  ;;  %v1299_v60 = vxor.u32 %v337_v9, %v321_v61  ;;  %v364_v6 = vand.u32 16777215, %v1219_v48  ;;  %v365_v1 = vand.u32 16777215, %v1221_v33 }
  0x5b   :  { %v366_v50 = vand.u32 16777215, %v1223_v40  ;;  %v1304_v52 = vxor.u32 %v338_v32, %v322_v10  ;;  %v367_v57 = vand.u32 16777215, %v1225_v55  ;;  %v368_v59 = vand.u32 16777215, %v1227_v56 }
  0x5c   :  { %v369_v36 = vand.u32 16777215, %v1229_v31  ;;  %v1309_v53 = vxor.u32 %v339_v20, %v323_v27  ;;  %v370_v37 = vand.u32 16777215, %v1231_v34  ;;  %v371_v44 = vand.u32 16777215, %v1236_v41 }
  0x5d   :  { %v372_v48 = vand.u32 16777215, %v1268_v35  ;;  %v1314_v58 = vxor.u32 %v340_v21, %v324_v63  ;;  %v375_v33 = vcvt.s32.f32 %v359_v47  ;;  %v376_v40 = vcvt.s32.f32 %v360_v12 }
  0x5e   :  { %v377_v38 = vcvt.s32.f32 %v361_v51  ;;  %v378_v42 = vcvt.s32.f32 %v362_v49  ;;  %v379_v11 = vcvt.s32.f32 %v363_v45  ;;  %v380_v55 = vcvt.s32.f32 %v364_v6 }
  0x5f   :  { %v381_v0 = vcvt.s32.f32 %v365_v1  ;;  %v382_v56 = vcvt.s32.f32 %v366_v50  ;;  %v383_v61 = vcvt.s32.f32 %v367_v57  ;;  %v384_v31 = vcvt.s32.f32 %v368_v59 }
  0x60   :  { %v389_v10 = vmul.f32 5.9604645e-08, %v373_v7  ;;  %v385_v13 = vcvt.s32.f32 %v369_v36  ;;  %v386_v27 = vcvt.s32.f32 %v370_v37  ;;  %v387_v34 = vcvt.s32.f32 %v371_v44 }
  0x61   :  { %v388_v16 = vcvt.s32.f32 %v372_v48  ;;  %v390_v41 = vmul.f32 5.9604645e-08, %v374_v15  ;;  %v391_v3 = vmul.f32 5.9604645e-08, %v375_v33  ;;  %v392_v35 = vmul.f32 5.9604645e-08, %v376_v40 }
  0x62   :  { %v393_v63 = vmul.f32 5.9604645e-08, %v377_v38  ;;  %v394_v4 = vmul.f32 5.9604645e-08, %v378_v42  ;;  %v395_v47 = vmul.f32 5.9604645e-08, %v379_v11  ;;  %v396_v12 = vmul.f32 5.9604645e-08, %v380_v55 }
  0x63   :  { %v397_v29 = vmul.f32 5.9604645e-08, %v381_v0  ;;  %v398_v5 = vmul.f32 5.9604645e-08, %v382_v56  ;;  %v399_v28 = vmul.f32 5.9604645e-08, %v383_v61  ;;  %v400_v17 = vmul.f32 5.9604645e-08, %v384_v31 }
  0x64   :  { %v405_v18 = vadd.f32 2.9802322e-08, %v389_v10  ;;  %v401_v30 = vmul.f32 5.9604645e-08, %v385_v13  ;;  %v402_v19 = vmul.f32 5.9604645e-08, %v386_v27  ;;  %v403_v8 = vmul.f32 5.9604645e-08, %v387_v34 }
  0x65   :  { %v404_v7 = vmul.f32 5.9604645e-08, %v388_v16  ;;  %v406_v9 = vadd.f32 2.9802322e-08, %v390_v41  ;;  %v407_v32 = vadd.f32 2.9802322e-08, %v391_v3  ;;  %v408_v20 = vadd.f32 2.9802322e-08, %v392_v35 }
  0x66   :  { %v409_v21 = vadd.f32 2.9802322e-08, %v393_v63  ;;  %v410_v15 = vadd.f32 2.9802322e-08, %v394_v4  ;;  %v411_v51 = vadd.f32 2.9802322e-08, %v395_v47  ;;  %v412_v49 = vadd.f32 2.9802322e-08, %v396_v12 }
  0x67   :  { %v1316_v45 = vadd.f32 2.9802322e-08, %v397_v29  ;;  %v1318_v6 = vadd.f32 2.9802322e-08, %v398_v5  ;;  %v1320_v1 = vadd.f32 2.9802322e-08, %v399_v28  ;;  %v421_v50 = vand.u32 16777215, %v1272_v62 }
  0x68   :  { %1044 = vlog2.f32 %v405_v18  ;;  %v1323_v57 = vadd.f32 2.9802322e-08, %v400_v17  ;;  %v1325_v59 = vadd.f32 2.9802322e-08, %v401_v30  ;;  %v1327_v36 = vadd.f32 2.9802322e-08, %v402_v19 }
  0x69   :  { %v422_v37 = vand.u32 16777215, %v1274_v39  ;;  %v1330_v44 = vadd.f32 2.9802322e-08, %v403_v8  ;;  %v1332_v48 = vadd.f32 2.9802322e-08, %v404_v7  ;;  %v423_v33 = vand.u32 16777215, %v1276_v22 }
  0x6a   :  { %v424_v40 = vand.u32 16777215, %v1278_v23  ;;  %v425_v38 = vand.u32 16777215, %v1280_v14  ;;  %v426_v62 = vand.u32 16777215, %v1282_v24  ;;  %v437_v0 = vcvt.s32.f32 %v421_v50 }
  0x6b   :  { %v427_v42 = vand.u32 16777215, %v1284_v25  ;;  %v428_v11 = vand.u32 16777215, %v1286_v26  ;;  %v429_v55 = vand.u32 16777215, %v1288_v46  ;;  %v438_v23 = vcvt.s32.f32 %v422_v37 }
  0x6c   :  { %v430_v39 = vand.u32 16777215, %v1290_v43  ;;  %v431_v56 = vand.u32 16777215, %v1292_v54  ;;  %v432_v61 = vand.u32 16777215, %v1294_v2  ;;  %v439_v31 = vcvt.s32.f32 %v423_v33 }
  0x6d   :  { %v433_v22 = vand.u32 16777215, %v1299_v60  ;;  %v434_v14 = vand.u32 16777215, %v1304_v52  ;;  %v435_v24 = vand.u32 16777215, %v1309_v53  ;;  %v440_v26 = vcvt.s32.f32 %v424_v40 }
  0x6e   :  { %v436_v25 = vand.u32 16777215, %v1314_v58  ;;  %v441_v10 = vcvt.s32.f32 %v425_v38  ;;  %v442_v46 = vcvt.s32.f32 %v426_v62  ;;  %1046 = vlog2.f32 %v406_v9 }
  0x6f   :  { %v443_v43 = vcvt.s32.f32 %v427_v42  ;;  %v444_v13 = vcvt.s32.f32 %v428_v11  ;;  %v445_v27 = vcvt.s32.f32 %v429_v55  ;;  %1048 = vlog2.f32 %v407_v32 }
  0x70   :  { %v446_v54 = vcvt.s32.f32 %v430_v39  ;;  %v447_v2 = vcvt.s32.f32 %v431_v56  ;;  %v448_v34 = vcvt.s32.f32 %v432_v61  ;;  %1050 = vlog2.f32 %v408_v20 }
  0x71   :  { %v449_v16 = vcvt.s32.f32 %v433_v22  ;;  %v450_v52 = vcvt.s32.f32 %v434_v14  ;;  %v451_v41 = vcvt.s32.f32 %v435_v24  ;;  %1052 = vlog2.f32 %v409_v21 }
  0x72   :  { %v1045_v60 = vpop.eup %1044  ;;  %v452_v53 = vcvt.s32.f32 %v436_v25  ;;  %v453_v58 = vmul.f32 5.9604645e-08, %v437_v0  ;;  %v454_v3 = vmul.f32 5.9604645e-08, %v438_v23  ;;  %1054 = vlog2.f32 %v410_v15 }
  0x73   :  { %v455_v35 = vmul.f32 5.9604645e-08, %v439_v31  ;;  %v456_v63 = vmul.f32 5.9604645e-08, %v440_v26  ;;  %v457_v4 = vmul.f32 5.9604645e-08, %v441_v10  ;;  %1056 = vlog2.f32 %v411_v51 }
  0x74   :  { %v458_v47 = vmul.f32 5.9604645e-08, %v442_v46  ;;  %v459_v12 = vmul.f32 5.9604645e-08, %v443_v43  ;;  %v470_v29 = vmul.f32 0.6931472, %v1045_v60  ;;  %1058 = vlog2.f32 %v412_v49 }
  0x75   :  { %v460_v5 = vmul.f32 5.9604645e-08, %v444_v13  ;;  %v461_v28 = vmul.f32 5.9604645e-08, %v445_v27  ;;  %v462_v17 = vmul.f32 5.9604645e-08, %v446_v54  ;;  %v463_v18 = vmul.f32 5.9604645e-08, %v447_v2 }
  0x76   :  { %v464_v30 = vmul.f32 5.9604645e-08, %v448_v34  ;;  %v465_v19 = vmul.f32 5.9604645e-08, %v449_v16  ;;  %v466_v8 = vmul.f32 5.9604645e-08, %v450_v52  ;;  %1060 = vlog2.f32 %v1316_v45 }
  0x77   :  { %v467_v7 = vmul.f32 5.9604645e-08, %v451_v41  ;;  %v468_v9 = vmul.f32 5.9604645e-08, %v452_v53  ;;  %v629_v32 = vmul.f32 2.0, %v453_v58  ;;  %v630_v20 = vmul.f32 2.0, %v454_v3 }
  0x78   :  { %v1047_v21 = vpop.eup %1046  ;;  %1062 = vlog2.f32 %v1318_v6  ;;  %v1350_v15 = vmul.f32 -2.0, %v470_v29  ;;  %v631_v51 = vmul.f32 2.0, %v455_v35  ;;  %v632_v49 = vmul.f32 2.0, %v456_v63 }
  0x79   :  { %v1049_v50 = vpop.eup %1048  ;;  %v472_v37 = vmul.f32 0.6931472, %v1047_v21  ;;  %1064 = vlog2.f32 %v1320_v1  ;;  %v633_v33 = vmul.f32 2.0, %v457_v4  ;;  %v634_v40 = vmul.f32 2.0, %v458_v47 }
  0x7a   :  { %v1051_v38 = vpop.eup %1050  ;;  %v474_v62 = vmul.f32 0.6931472, %v1049_v50  ;;  %1066 = vlog2.f32 %v1323_v57  ;;  %v635_v45 = vmul.f32 2.0, %v459_v12  ;;  %v636_v42 = vmul.f32 2.0, %v460_v5 }
  0x7b   :  { %v1053_v11 = vpop.eup %1052  ;;  %v476_v55 = vmul.f32 0.6931472, %v1051_v38  ;;  %1068 = vlog2.f32 %v1325_v59  ;;  %v522_v6 = vand.u32 2147483648, %v1350_v15  ;;  %v637_v39 = vmul.f32 2.0, %v461_v28 }
  0x7c   :  { %v1055_v0 = vpop.eup %1054  ;;  %1070 = vlog2.f32 %v1327_v36  ;;  %v1357_v56 = vmul.f32 -2.0, %v472_v37  ;;  %v638_v1 = vmul.f32 2.0, %v462_v17  ;;  %v639_v61 = vmul.f32 2.0, %v463_v18 }
  0x7d   :  { %v1057_v22 = vpop.eup %1056  ;;  %v478_v23 = vmul.f32 0.6931472, %v1053_v11  ;;  %1072 = vlog2.f32 %v1330_v44  ;;  %v1360_v57 = vmul.f32 -2.0, %v474_v62  ;;  %v640_v14 = vmul.f32 2.0, %v464_v30 }
  0x7e   :  { %v1059_v24 = vpop.eup %1058  ;;  %v480_v25 = vmul.f32 0.6931472, %v1055_v0  ;;  %1074 = vlog2.f32 %v1332_v48  ;;  %v641_v59 = vmul.f32 2.0, %v465_v19  ;;  %v642_v31 = vmul.f32 2.0, %v466_v8 }
  0x7f   :  { %v482_v26 = vmul.f32 0.6931472, %v1057_v22  ;;  %v1363_v10 = vmul.f32 -2.0, %v476_v55  ;;  %1076 = vrsqrt.f32 %v1350_v15  ;;  %v643_v36 = vmul.f32 2.0, %v467_v7 }
  0x80   :  { %v1061_v46 = vpop.eup %1060  ;;  %1078 = vrsqrt.f32 %v1357_v56  ;;  %v644_v43 = vmul.f32 2.0, %v468_v9  ;;  %v1027_v44 = vadd.f32 -1.0, %v629_v32  ;;  %v1028_v13 = vadd.f32 -1.0, %v630_v20 }
  0x81   :  { %v484_v27 = vmul.f32 0.6931472, %v1059_v24  ;;  %v1367_v54 = vmul.f32 -2.0, %v478_v23  ;;  %1080 = vrsqrt.f32 %v1360_v57  ;;  %v1029_v48 = vadd.f32 -1.0, %v631_v51 }
  0x82   :  { %v1063_v2 = vpop.eup %1062  ;;  %v1370_v34 = vmul.f32 -2.0, %v480_v25  ;;  %v1372_v60 = vadd.f32 -1.0, %v632_v49  ;;  %v1374_v16 = vadd.f32 -1.0, %v633_v33  ;;  %v1376_v52 = vadd.f32 -1.0, %v634_v40 }
  0x83   :  { %v1065_v41 = vpop.eup %1064  ;;  %v486_v53 = vmul.f32 0.6931472, %v1061_v46  ;;  %v1378_v58 = vmul.f32 -2.0, %v482_v26  ;;  %1082 = vrsqrt.f32 %v1363_v10  ;;  %v1381_v3 = vadd.f32 -1.0, %v635_v45 }
  0x84   :  { %v1067_v35 = vpop.eup %1066  ;;  %v1383_v63 = vadd.f32 -1.0, %v636_v42  ;;  %v1385_v4 = vadd.f32 -1.0, %v637_v39  ;;  %v1387_v47 = vadd.f32 -1.0, %v638_v1  ;;  %v1389_v12 = vadd.f32 -1.0, %v639_v61 }
  0x85   :  { %v1069_v29 = vpop.eup %1068  ;;  %v488_v5 = vmul.f32 0.6931472, %v1063_v2  ;;  %v1391_v28 = vmul.f32 -2.0, %v484_v27  ;;  %vm519_vm0 = vcmp.eq.f32.partialorder %v1350_v15, inf  ;;  %1084 = vrsqrt.f32 %v1367_v54 }
  0x86   :  { %v1395_v17 = vadd.f32 -1.0, %v640_v14  ;;  %v1071_v18 = vpop.eup %1070  ;;  %1086 = vrsqrt.f32 %v1370_v34  ;;  %v1398_v30 = vadd.f32 -1.0, %v641_v59  ;;  %v1400_v19 = vadd.f32 -1.0, %v642_v31 }
  0x87   :  { %v1402_v8 = vadd.f32 -1.0, %v643_v36  ;;  %v1073_v7 = vpop.eup %1072  ;;  %v490_v9 = vmul.f32 0.6931472, %v1065_v41  ;;  %v1404_v32 = vmul.f32 -2.0, %v486_v53  ;;  %1088 = vrsqrt.f32 %v1378_v58 }
  0x88   :  { %v1407_v20 = vadd.f32 -1.0, %v644_v43  ;;  %v1075_v21 = vpop.eup %1074  ;;  %vm521_vm1 = vcmp.eq.f32.partialorder %v1350_v15, 0.0  ;;  %v1410_v51 = vmul.f32 3.1415927, %v1027_v44  ;;  %v1412_v49 = vmul.f32 3.1415927, %v1028_v13 }
  0x89   :  { %v1414_v50 = vmul.f32 3.1415927, %v1029_v48  ;;  %v1077_v37 = vpop.eup %1076  ;;  %v492_v33 = vmul.f32 0.6931472, %v1067_v35  ;;  %v1416_v40 = vmul.f32 -2.0, %v488_v5  ;;  %vm526_vm2 = vcmp.eq.f32.partialorder %v1357_v56, inf }
  0x8a   :  { %1090 = vrsqrt.f32 %v1391_v28  ;;  %v1079_v38 = vpop.eup %1078  ;;  %vm528_vm3 = vcmp.eq.f32.partialorder %v1357_v56, 0.0  ;;  %v529_v62 = vand.u32 2147483648, %v1357_v56  ;;  %vm533_vm4 = vcmp.eq.f32.partialorder %v1360_v57, inf }
  0x8b   :  { %vm535_vm5 = vcmp.eq.f32.partialorder %v1360_v57, 0.0  ;;  %v536_v45 = vand.u32 2147483648, %v1360_v57  ;;  %v1081_v42 = vpop.eup %1080  ;;  %v494_v11 = vmul.f32 0.6931472, %v1069_v29  ;;  %v496_v55 = vmul.f32 0.6931472, %v1071_v18 }
  0x8c   :  { %v1425_v39 = vmul.f32 -2.0, %v490_v9  ;;  %1092 = vrsqrt.f32 %v1404_v32  ;;  %v498_v0 = vmul.f32 0.6931472, %v1073_v7  ;;  %v518_v1 = vmul.f32 %v1077_v37, %v1350_v15 }
  0x8d   :  { %vm540_vm6 = vcmp.eq.f32.partialorder %v1363_v10, inf  ;;  %vm542_vm7 = vcmp.eq.f32.partialorder %v1363_v10, 0.0  ;;  %v1083_v61 = vpop.eup %1082  ;;  %v500_v22 = vmul.f32 0.6931472, %v1075_v21  ;;  %v1431_v23 = vmul.f32 -2.0, %v492_v33 }
  0x8e   :  { %v543_v14 = vand.u32 2147483648, %v1363_v10  ;;  %1094 = vrsqrt.f32 %v1416_v40  ;;  %v525_v24 = vmul.f32 %v1079_v38, %v1357_v56  ;;  %v532_v25 = vmul.f32 %v1081_v42, %v1360_v57 }
  0x8f   :  { %vm547_vm8 = vcmp.eq.f32.partialorder %v1367_v54, inf  ;;  %v550_v59 = vand.u32 2147483648, %v1367_v54  ;;  %v1085_v31 = vpop.eup %1084  ;;  %v1439_v26 = vmul.f32 -2.0, %v494_v11  ;;  %v1441_v36 = vmul.f32 -2.0, %v496_v55 }
  0x90   :  { %vm549_vm9 = vcmp.eq.f32.partialorder %v1367_v54, 0.0  ;;  %vm554_vm10 = vcmp.eq.f32.partialorder %v1370_v34, inf  ;;  %1096 = vrsqrt.f32 %v1425_v39  ;;  %v1087_v46 = vpop.eup %1086  ;;  %v1446_v43 = vmul.f32 -2.0, %v498_v0 }
  0x91   :  { %v520_v44 = vsel %vm519_vm0, %v1350_v15, %v518_v1  ;;  %v539_v13 = vmul.f32 %v1083_v61, %v1363_v10  ;;  %vm556_vm11 = vcmp.eq.f32.partialorder %v1370_v34, 0.0  ;;  %v557_v27 = vand.u32 2147483648, %v1370_v34  ;;  %v1089_v48 = vpop.eup %1088 }
  0x92   :  { %v1454_v2 = vmul.f32 -2.0, %v500_v22  ;;  %vm561_vm12 = vcmp.eq.f32.partialorder %v1378_v58, inf  ;;  %vm563_vm13 = vcmp.eq.f32.partialorder %v1378_v58, 0.0  ;;  %1098 = vrsqrt.f32 %v1431_v23 }
  0x93   :  { %v527_v41 = vsel %vm526_vm2, %v1357_v56, %v525_v24  ;;  %v534_v53 = vsel %vm533_vm4, %v1360_v57, %v532_v25  ;;  %v564_v35 = vand.u32 2147483648, %v1378_v58  ;;  %vm568_vm14 = vcmp.eq.f32.partialorder %v1391_v28, inf }
  0x94   :  { %v1091_v29 = vpop.eup %1090  ;;  %v1471_v5 = vsel %vm521_vm1, %v522_v6, %v520_v44  ;;  %v546_v18 = vmul.f32 %v1085_v31, %v1367_v54  ;;  %vm570_vm15 = vcmp.eq.f32.partialorder %v1391_v28, 0.0  ;;  %v571_v7 = vand.u32 2147483648, %v1391_v28 }
  0x95   :  { %v541_v9 = vsel %vm540_vm6, %v1363_v10, %v539_v13  ;;  %v553_v21 = vmul.f32 %v1087_v46, %v1370_v34  ;;  %v560_v37 = vmul.f32 %v1089_v48, %v1378_v58  ;;  %1100 = vrsqrt.f32 %v1439_v26 }
  0x96   :  { %v1093_v33 = vpop.eup %1092  ;;  %v1484_v15 = vsel %vm528_vm3, %v529_v62, %v527_v41  ;;  %v1488_v6 = vsel %vm535_vm5, %v536_v45, %v534_v53  ;;  %v567_v38 = vmul.f32 %v1091_v29, %v1391_v28  ;;  %vm575_vm0 = vcmp.eq.f32.partialorder %v1404_v32, inf }
  0x97   :  { %vm577_vm1 = vcmp.eq.f32.partialorder %v1404_v32, 0.0  ;;  %v578_v42 = vand.u32 2147483648, %v1404_v32  ;;  %vm582_vm2 = vcmp.eq.f32.partialorder %v1416_v40, inf  ;;  %1102 = vrsqrt.f32 %v1441_v36 }
  0x98   :  { %v1095_v11 = vpop.eup %1094  ;;  %v1498_v56 = vsel %vm542_vm7, %v543_v14, %v541_v9  ;;  %v548_v57 = vsel %vm547_vm8, %v1367_v54, %v546_v18  ;;  %vm584_vm3 = vcmp.eq.f32.partialorder %v1416_v40, 0.0  ;;  %v585_v62 = vand.u32 2147483648, %v1416_v40 }
  0x99   :  { %v555_v45 = vsel %vm554_vm10, %v1370_v34, %v553_v21  ;;  %v562_v55 = vsel %vm561_vm12, %v1378_v58, %v560_v37  ;;  %v574_v10 = vmul.f32 %v1093_v33, %v1404_v32  ;;  %vm589_vm4 = vcmp.eq.f32.partialorder %v1425_v39, inf }
  0x9a   :  { %v1097_v0 = vpop.eup %1096  ;;  %v569_v1 = vsel %vm568_vm14, %v1391_v28, %v567_v38  ;;  %v581_v61 = vmul.f32 %v1095_v11, %v1416_v40  ;;  %vm591_vm5 = vcmp.eq.f32.partialorder %v1425_v39, 0.0  ;;  %v592_v22 = vand.u32 2147483648, %v1425_v39 }
  0x9b   :  { %v1521_v14 = vsel %vm549_vm9, %v550_v59, %v548_v57  ;;  %v588_v24 = vmul.f32 %v1097_v0, %v1425_v39  ;;  %vm596_vm6 = vcmp.eq.f32.partialorder %v1431_v23, inf  ;;  %v599_v25 = vand.u32 2147483648, %v1431_v23 }
  0x9c   :  { %v1099_v31 = vpop.eup %1098  ;;  %v1528_v46 = vsel %vm556_vm11, %v557_v27, %v555_v45  ;;  %v1532_v44 = vsel %vm563_vm13, %v564_v35, %v562_v55  ;;  %v606_v13 = vand.u32 2147483648, %v1439_v26  ;;  %v613_v54 = vand.u32 2147483648, %v1441_v36 }
  0x9d   :  { %v1538_v59 = vsel %vm570_vm15, %v571_v7, %v569_v1  ;;  %v576_v48 = vsel %vm575_vm0, %v1404_v32, %v574_v10  ;;  %1104 = vrsqrt.f32 %v1446_v43  ;;  %v583_v58 = vsel %vm582_vm2, %v1416_v40, %v581_v61 }
  0x9e   :  { %vm603_vm7 = vcmp.eq.f32.partialorder %v1439_v26, inf  ;;  %1106 = vrsqrt.f32 %v1454_v2  ;;  %v664_v27 = vmul.f32 3.1415927, %v1372_v60  ;;  %v590_v53 = vsel %vm589_vm4, %v1425_v39, %v588_v24 }
  0x9f   :  { %v1101_v41 = vpop.eup %1100  ;;  %v595_v35 = vmul.f32 %v1099_v31, %v1431_v23  ;;  %v665_v29 = vmul.f32 3.1415927, %v1374_v16  ;;  %v666_v18 = vmul.f32 3.1415927, %v1376_v52  ;;  %v1560_v7 = vsel %vm577_vm1, %v578_v42, %v576_v48 }
  0xa0   :  { %vm610_vm8 = vcmp.eq.f32.partialorder %v1441_v36, inf  ;;  %v667_v9 = vmul.f32 3.1415927, %v1381_v3  ;;  %v668_v60 = vmul.f32 3.1415927, %v1383_v63  ;;  %v1568_v33 = vsel %vm584_vm3, %v585_v62, %v583_v58 }
  0xa1   :  { %v669_v21 = vmul.f32 3.1415927, %v1385_v4  ;;  %v1103_v37 = vpop.eup %1102  ;;  %vm598_vm9 = vcmp.eq.f32.partialorder %v1431_v23, 0.0  ;;  %v670_v16 = vmul.f32 3.1415927, %v1387_v47  ;;  %v1576_v3 = vsel %vm591_vm5, %v592_v22, %v590_v53 }
  0xa2   :  { %v671_v52 = vmul.f32 3.1415927, %v1389_v12  ;;  %v672_v32 = vmul.f32 3.1415927, %v1395_v17  ;;  %v602_v63 = vmul.f32 %v1101_v41, %v1439_v26  ;;  %vm605_vm10 = vcmp.eq.f32.partialorder %v1439_v26, 0.0 }
  0xa3   :  { %v673_v4 = vmul.f32 3.1415927, %v1398_v30  ;;  %v674_v40 = vmul.f32 3.1415927, %v1400_v19  ;;  %v597_v47 = vsel %vm596_vm6, %v1431_v23, %v595_v35  ;;  %vm612_vm11 = vcmp.eq.f32.partialorder %v1441_v36, 0.0 }
  0xa4   :  { %v675_v12 = vmul.f32 3.1415927, %v1402_v8  ;;  %v676_v17 = vmul.f32 3.1415927, %v1407_v20  ;;  %v1590_v39 = vmul.f32 %v1410_v51, %v1410_v51  ;;  %v609_v38 = vmul.f32 %v1103_v37, %v1441_v36 }
  0xa5   :  { %vm617_vm12 = vcmp.eq.f32.partialorder %v1446_v43, inf  ;;  %v1596_v30 = vmul.f32 %v1412_v49, %v1412_v49  ;;  %v1600_v19 = vmul.f32 %v1414_v50, %v1414_v50  ;;  %v1602_v42 = vmul.f32 %v664_v27, %v664_v27 }
  0xa6   :  { %v1604_v8 = vmul.f32 %v665_v29, %v665_v29  ;;  %v1606_v20 = vmul.f32 %v666_v18, %v666_v18  ;;  %v1608_v51 = vmul.f32 %v667_v9, %v667_v9  ;;  %v1610_v11 = vmul.f32 %v668_v60, %v668_v60 }
  0xa7   :  { %v1612_v57 = vmul.f32 %v669_v21, %v669_v21  ;;  %v1614_v62 = vmul.f32 %v670_v16, %v670_v16  ;;  %v1616_v49 = vmul.f32 %v671_v52, %v671_v52  ;;  %v1618_v45 = vmul.f32 %v672_v32, %v672_v32  ;;  %v1105_v50 = vpop.eup %1104 }
  0xa8   :  { %v1620_v55 = vmul.f32 %v673_v4, %v673_v4  ;;  %v1622_v10 = vmul.f32 %v674_v40, %v674_v40  ;;  %v1624_v0 = vmul.f32 %v675_v12, %v675_v12  ;;  %v693_v1 = vmul.f32 -2.755732e-07, %v1590_v39  ;;  %v1107_v61 = vpop.eup %1106 }
  0xa9   :  { %v1627_v22 = vmul.f32 %v676_v17, %v676_v17  ;;  %v694_v24 = vmul.f32 -2.755732e-07, %v1596_v30  ;;  %v695_v31 = vmul.f32 -2.755732e-07, %v1600_v19  ;;  %v696_v48 = vmul.f32 -2.755732e-07, %v1602_v42 }
  0xaa   :  { %v604_v58 = vsel %vm603_vm7, %v1439_v26, %v602_v63  ;;  %v697_v27 = vmul.f32 -2.755732e-07, %v1604_v8  ;;  %v698_v41 = vmul.f32 -2.755732e-07, %v1606_v20  ;;  %v699_v53 = vmul.f32 -2.755732e-07, %v1608_v51 }
  0xab   :  { %v616_v35 = vmul.f32 %v1105_v50, %v1446_v43  ;;  %v700_v29 = vmul.f32 -2.755732e-07, %v1610_v11  ;;  %v701_v18 = vmul.f32 -2.755732e-07, %v1612_v57  ;;  %v702_v9 = vmul.f32 -2.755732e-07, %v1614_v62 }
  0xac   :  { %v611_v60 = vsel %vm610_vm8, %v1441_v36, %v609_v38  ;;  %v703_v21 = vmul.f32 -2.755732e-07, %v1616_v49  ;;  %v704_v37 = vmul.f32 -2.755732e-07, %v1618_v45  ;;  %v705_v16 = vmul.f32 -2.755732e-07, %v1620_v55 }
  0xad   :  { %v1652_v52 = vsel %vm598_vm9, %v599_v25, %v597_v47  ;;  %v706_v32 = vmul.f32 -2.755732e-07, %v1622_v10  ;;  %v707_v63 = vmul.f32 -2.755732e-07, %v1624_v0  ;;  %v708_v4 = vmul.f32 -2.755732e-07, %v1627_v22 }
  0xae   :  { %v1661_v40 = vsel %vm605_vm10, %v606_v13, %v604_v58  ;;  %vm624_vm13 = vcmp.eq.f32.partialorder %v1454_v2, inf  ;;  %v709_v12 = vadd.f32 2.4801588e-05, %v693_v1  ;;  %v710_v17 = vadd.f32 2.4801588e-05, %v694_v24 }
  0xaf   :  { %1794 = vst [vmem:[#allocation5_spill] sm:$0xff] %v1661_v40  ;;  %v711_v38 = vadd.f32 2.4801588e-05, %v695_v31  ;;  %v1668_v23 = vsel %vm612_vm11, %v613_v54, %v611_v60  ;;  %v712_v25 = vadd.f32 2.4801588e-05, %v696_v48  ;;  %v1673_v26 = vsel %vm617_vm12, %v1446_v43, %v616_v35 }
  0xb0   :  { %v713_v47 = vadd.f32 2.4801588e-05, %v697_v27  ;;  %v714_v50 = vadd.f32 2.4801588e-05, %v698_v41  ;;  %v715_v13 = vadd.f32 2.4801588e-05, %v699_v53  ;;  %v623_v1 = vmul.f32 %v1107_v61, %v1454_v2 }
  0xb1   :  { %v716_v58 = vadd.f32 2.4801588e-05, %v700_v29  ;;  %v717_v28 = vadd.f32 2.4801588e-05, %v701_v18  ;;  %v718_v24 = vadd.f32 2.4801588e-05, %v702_v9  ;;  %v725_v54 = vmul.f32 %v709_v12, %v1590_v39 }
  0xb2   :  { %v719_v31 = vadd.f32 2.4801588e-05, %v703_v21  ;;  %v720_v34 = vadd.f32 2.4801588e-05, %v704_v37  ;;  %v721_v40 = vadd.f32 2.4801588e-05, %v705_v16  ;;  %v726_v48 = vmul.f32 %v710_v17, %v1596_v30 }
  0xb3   :  { %v722_v36 = vadd.f32 2.4801588e-05, %v706_v32  ;;  %v723_v27 = vadd.f32 2.4801588e-05, %v707_v63  ;;  %v727_v41 = vmul.f32 %v711_v38, %v1600_v19  ;;  %v728_v35 = vmul.f32 %v712_v25, %v1602_v42 }
  0xb4   :  { %v729_v53 = vmul.f32 %v713_v47, %v1604_v8  ;;  %v724_v29 = vadd.f32 2.4801588e-05, %v708_v4  ;;  %v730_v18 = vmul.f32 %v714_v50, %v1606_v20  ;;  %v731_v61 = vmul.f32 %v715_v13, %v1608_v51 }
  0xb5   :  { %v732_v9 = vmul.f32 %v716_v58, %v1610_v11  ;;  %v733_v60 = vmul.f32 %v717_v28, %v1612_v57  ;;  %v734_v21 = vmul.f32 %v718_v24, %v1614_v62  ;;  %v735_v37 = vmul.f32 %v719_v31, %v1616_v49 }
  0xb6   :  { %v736_v16 = vmul.f32 %v720_v34, %v1618_v45  ;;  %vm619_vm14 = vcmp.eq.f32.partialorder %v1446_v43, 0.0  ;;  %v737_v32 = vmul.f32 %v721_v40, %v1620_v55  ;;  %v738_v63 = vmul.f32 %v722_v36, %v1622_v10 }
  0xb7   :  { %v741_v4 = vadd.f32 -0.0013888889, %v725_v54  ;;  %v742_v12 = vadd.f32 -0.0013888889, %v726_v48  ;;  %vm626_vm15 = vcmp.eq.f32.partialorder %v1454_v2, 0.0  ;;  %v739_v17 = vmul.f32 %v723_v27, %v1624_v0 }
  0xb8   :  { %v743_v38 = vadd.f32 -0.0013888889, %v727_v41  ;;  %v744_v28 = vadd.f32 -0.0013888889, %v728_v35  ;;  %v745_v25 = vadd.f32 -0.0013888889, %v729_v53  ;;  %v740_v47 = vmul.f32 %v724_v29, %v1627_v22 }
  0xb9   :  { %v746_v50 = vadd.f32 -0.0013888889, %v730_v18  ;;  %v747_v13 = vadd.f32 -0.0013888889, %v731_v61  ;;  %v748_v34 = vadd.f32 -0.0013888889, %v732_v9  ;;  %v625_v40 = vsel %vm624_vm13, %v1454_v2, %v623_v1 }
  0xba   :  { %v749_v58 = vadd.f32 -0.0013888889, %v733_v60  ;;  %v750_v24 = vadd.f32 -0.0013888889, %v734_v21  ;;  %v751_v31 = vadd.f32 -0.0013888889, %v735_v37  ;;  %v757_v27 = vmul.f32 %v741_v4, %v1590_v39 }
  0xbb   :  { %v752_v36 = vadd.f32 -0.0013888889, %v736_v16  ;;  %v753_v54 = vadd.f32 -0.0013888889, %v737_v32  ;;  %v754_v48 = vadd.f32 -0.0013888889, %v738_v63  ;;  %v758_v35 = vmul.f32 %v742_v12, %v1596_v30 }
  0xbc   :  { %v755_v41 = vadd.f32 -0.0013888889, %v739_v17  ;;  %v759_v53 = vmul.f32 %v743_v38, %v1600_v19  ;;  %v760_v29 = vmul.f32 %v744_v28, %v1602_v42  ;;  %v756_v18 = vadd.f32 -0.0013888889, %v740_v47 }
  0xbd   :  { %v761_v61 = vmul.f32 %v745_v25, %v1604_v8  ;;  %v762_v1 = vmul.f32 %v746_v50, %v1606_v20  ;;  %v763_v9 = vmul.f32 %v747_v13, %v1608_v51  ;;  %v764_v60 = vmul.f32 %v748_v34, %v1610_v11 }
  0xbe   :  { %v765_v21 = vmul.f32 %v749_v58, %v1612_v57  ;;  %v766_v37 = vmul.f32 %v750_v24, %v1614_v62  ;;  %v767_v16 = vmul.f32 %v751_v31, %v1616_v49  ;;  %v768_v32 = vmul.f32 %v752_v36, %v1618_v45 }
  0xbf   :  { %v769_v63 = vmul.f32 %v753_v54, %v1620_v55  ;;  %v770_v4 = vmul.f32 %v754_v48, %v1622_v10  ;;  %v773_v12 = vadd.f32 0.041666668, %v757_v27  ;;  %v771_v17 = vmul.f32 %v755_v41, %v1624_v0 }
  0xc0   :  { %v774_v38 = vadd.f32 0.041666668, %v758_v35  ;;  %v775_v28 = vadd.f32 0.041666668, %v759_v53  ;;  %v776_v25 = vadd.f32 0.041666668, %v760_v29  ;;  %v772_v47 = vmul.f32 %v756_v18, %v1627_v22 }
  0xc1   :  { %v777_v50 = vadd.f32 0.041666668, %v761_v61  ;;  %v778_v13 = vadd.f32 0.041666668, %v762_v1  ;;  %v779_v34 = vadd.f32 0.041666668, %v763_v9  ;;  %v789_v61 = vmul.f32 %v773_v12, %v1590_v39 }
  0xc2   :  { %v1795_v58 = vand.u32 2147483648, %v1446_v43  ;;  %v780_v31 = vadd.f32 0.041666668, %v764_v60  ;;  %v781_v36 = vadd.f32 0.041666668, %v765_v21  ;;  %v1796_v48 = vand.u32 2147483648, %v1454_v2 }
  0xc3   :  { %v782_v54 = vadd.f32 0.041666668, %v766_v37  ;;  %v783_v41 = vadd.f32 0.041666668, %v767_v16  ;;  %v784_v35 = vadd.f32 0.041666668, %v768_v32  ;;  %v790_v43 = vmul.f32 %v774_v38, %v1596_v30 }
  0xc4   :  { %v1718_v24 = vsel %vm619_vm14, %v1795_v58, %v1673_v26  ;;  %v1724_v27 = vsel %vm626_vm15, %v1796_v48, %v625_v40  ;;  %v785_v53 = vadd.f32 0.041666668, %v769_v63  ;;  %v786_v29 = vadd.f32 0.041666668, %v770_v4 }
  0xc5   :  { %1797 = vst [vmem:[#allocation6_spill] sm:$0xff] %v1724_v27  ;;  %v787_v18 = vadd.f32 0.041666668, %v771_v17  ;;  %v788_v26 = vadd.f32 0.041666668, %v772_v47  ;;  %v791_v1 = vmul.f32 %v775_v28, %v1600_v19  ;;  %v792_v9 = vmul.f32 %v776_v25, %v1602_v42 }
  0xc6   :  { %v793_v60 = vmul.f32 %v777_v50, %v1604_v8  ;;  %v794_v2 = vmul.f32 %v778_v13, %v1606_v20  ;;  %v795_v40 = vmul.f32 %v779_v34, %v1608_v51  ;;  %v796_v21 = vmul.f32 %v780_v31, %v1610_v11 }
  0xc7   :  { %v797_v37 = vmul.f32 %v781_v36, %v1612_v57  ;;  %v798_v16 = vmul.f32 %v782_v54, %v1614_v62  ;;  %v799_v32 = vmul.f32 %v783_v41, %v1616_v49  ;;  %v800_v63 = vmul.f32 %v784_v35, %v1618_v45 }
  0xc8   :  { %v801_v4 = vmul.f32 %v785_v53, %v1620_v55  ;;  %v802_v12 = vmul.f32 %v786_v29, %v1622_v10  ;;  %v803_v17 = vmul.f32 %v787_v18, %v1624_v0  ;;  %v805_v38 = vadd.f32 -0.5, %v789_v61 }
  0xc9   :  { %v806_v28 = vadd.f32 -0.5, %v790_v43  ;;  %v804_v25 = vmul.f32 %v788_v26, %v1627_v22  ;;  %v807_v47 = vadd.f32 -0.5, %v791_v1  ;;  %v808_v50 = vadd.f32 -0.5, %v792_v9 }
  0xca   :  { %v809_v13 = vadd.f32 -0.5, %v793_v60  ;;  %v810_v34 = vadd.f32 -0.5, %v794_v2  ;;  %v811_v58 = vadd.f32 -0.5, %v795_v40  ;;  %v812_v31 = vadd.f32 -0.5, %v796_v21 }
  0xcb   :  { %v813_v36 = vadd.f32 -0.5, %v797_v37  ;;  %v814_v54 = vadd.f32 -0.5, %v798_v16  ;;  %v815_v48 = vadd.f32 -0.5, %v799_v32  ;;  %v816_v41 = vadd.f32 -0.5, %v800_v63 }
  0xcc   :  { %v817_v35 = vadd.f32 -0.5, %v801_v4  ;;  %v818_v53 = vadd.f32 -0.5, %v802_v12  ;;  %v819_v27 = vadd.f32 -0.5, %v803_v17  ;;  %v821_v29 = vmul.f32 %v805_v38, %v1590_v39 }
  0xcd   :  { %v822_v18 = vmul.f32 %v806_v28, %v1596_v30  ;;  %v820_v61 = vadd.f32 -0.5, %v804_v25  ;;  %v823_v43 = vmul.f32 %v807_v47, %v1600_v19  ;;  %v824_v26 = vmul.f32 %v808_v50, %v1602_v42 }
  0xce   :  { %v825_v1 = vmul.f32 %v809_v13, %v1604_v8  ;;  %v826_v9 = vmul.f32 %v810_v34, %v1606_v20  ;;  %v827_v60 = vmul.f32 %v811_v58, %v1608_v51  ;;  %v828_v2 = vmul.f32 %v812_v31, %v1610_v11  ;;  %v1798_v31 = vld [vmem:[#allocation5_spill] sm:$0xff] }
  0xcf   :  { %v829_v40 = vmul.f32 %v813_v36, %v1612_v57  ;;  %v830_v21 = vmul.f32 %v814_v54, %v1614_v62  ;;  %v831_v39 = vmul.f32 %v815_v48, %v1616_v49  ;;  %v832_v30 = vmul.f32 %v816_v41, %v1618_v45  ;;  %v1799_v54 = vld [vmem:[#allocation6_spill] sm:$0xff] }
  0xd0   :  { %v833_v19 = vmul.f32 %v817_v35, %v1620_v55  ;;  %v834_v42 = vmul.f32 %v818_v53, %v1622_v10  ;;  %v835_v8 = vmul.f32 %v819_v27, %v1624_v0  ;;  %v837_v37 = vadd.f32 1.0, %v821_v29 }
  0xd1   :  { %v838_v20 = vadd.f32 1.0, %v822_v18  ;;  %v836_v51 = vmul.f32 %v820_v61, %v1627_v22  ;;  %v839_v16 = vadd.f32 1.0, %v823_v43  ;;  %v840_v11 = vadd.f32 1.0, %v824_v26 }
  0xd2   :  { %v841_v32 = vadd.f32 1.0, %v825_v1  ;;  %v842_v57 = vadd.f32 1.0, %v826_v9  ;;  %v843_v63 = vadd.f32 1.0, %v827_v60  ;;  %v844_v62 = vadd.f32 1.0, %v828_v2 }
  0xd3   :  { %v845_v4 = vadd.f32 1.0, %v829_v40  ;;  %v846_v49 = vadd.f32 1.0, %v830_v21  ;;  %v847_v12 = vadd.f32 1.0, %v831_v39  ;;  %v848_v45 = vadd.f32 1.0, %v832_v30 }
  0xd4   :  { %v849_v17 = vadd.f32 1.0, %v833_v19  ;;  %v850_v55 = vadd.f32 1.0, %v834_v42  ;;  %v851_v38 = vadd.f32 1.0, %v835_v8  ;;  %v853_v10 = vmul.f32 %v837_v37, %v1471_v5 }
  0xd5   :  { %v854_v0 = vmul.f32 %v838_v20, %v1484_v15  ;;  %v852_v27 = vadd.f32 1.0, %v836_v51  ;;  %v855_v22 = vmul.f32 %v839_v16, %v1488_v6  ;;  %v856_v28 = vmul.f32 %v840_v11, %v1498_v56 }
  0xd6   :  { %v857_v25 = vmul.f32 %v841_v32, %v1521_v14  ;;  %v858_v47 = vmul.f32 %v842_v57, %v1528_v46  ;;  %v859_v50 = vmul.f32 %v843_v63, %v1532_v44  ;;  %v860_v13 = vmul.f32 %v844_v62, %v1538_v59 }
  0xd7   :  { %v861_v34 = vmul.f32 %v845_v4, %v1560_v7  ;;  %v862_v58 = vmul.f32 %v846_v49, %v1568_v33  ;;  %v863_v5 = vmul.f32 %v847_v12, %v1576_v3  ;;  %v864_v15 = vmul.f32 %v848_v45, %v1652_v52 }
  0xd8   :  { %v865_v6 = vmul.f32 %v849_v17, %v1798_v31  ;;  %v866_v56 = vmul.f32 %v850_v55, %v1668_v23  ;;  %v867_v14 = vmul.f32 %v851_v38, %v1718_v24  ;;  %v869_v36 = vmul.f32 0.11111111, %v853_v10  ;;  %v1800_v55 = vld [vmem:[#allocation4_spill] sm:$0xff] }
  0xd9   :  { %v870_v46 = vmul.f32 0.11111111, %v854_v0  ;;  %v868_v44 = vmul.f32 %v852_v27, %v1799_v54  ;;  %v871_v48 = vmul.f32 0.11111111, %v855_v22  ;;  %v872_v59 = vmul.f32 0.11111111, %v856_v28 }
  0xda   :  { %v873_v41 = vmul.f32 0.11111111, %v857_v25  ;;  %v874_v7 = vmul.f32 0.11111111, %v858_v47  ;;  %v875_v35 = vmul.f32 0.11111111, %v859_v50 }
  0xdb   :  { %v876_v33 = vmul.f32 0.11111111, %v860_v13  ;;  %v877_v53 = vmul.f32 0.11111111, %v861_v34  ;;  %v878_v3 = vmul.f32 0.11111111, %v862_v58 }
  0xdc   :  { %v879_v29 = vmul.f32 0.11111111, %v863_v5  ;;  %v880_v52 = vmul.f32 0.11111111, %v864_v15  ;;  %v881_v18 = vmul.f32 0.11111111, %v865_v6 }
  0xdd   :  { %v882_v61 = vmul.f32 0.11111111, %v866_v56  ;;  %v883_v43 = vmul.f32 0.11111111, %v867_v14  ;;  %v884_v23 = vmul.f32 0.11111111, %v868_v44 }
  0xde   :  { %v885_v26 = vadd.f32 1.0, %v869_v36  ;;  %v886_v24 = vadd.f32 1.0, %v870_v46  ;;  %v887_v1 = vadd.f32 1.0, %v871_v48  ;;  %v888_v9 = vadd.f32 1.0, %v872_v59  ;;  %v901_v6 = vld [vmem:[%s1788_s1] sm:$0xff]  ;;  %v902_v36 = vld [vmem:[%s1788_s1 + $0x8] sm:$0xff] }
  0xdf   :  { %v889_v60 = vadd.f32 1.0, %v873_v41  ;;  %v890_v2 = vadd.f32 1.0, %v874_v7  ;;  %v891_v40 = vadd.f32 1.0, %v875_v35  ;;  %v892_v21 = vadd.f32 1.0, %v876_v33 }
  0xe0   :  { %v893_v39 = vadd.f32 1.0, %v877_v53  ;;  %v894_v30 = vadd.f32 1.0, %v878_v3  ;;  %v895_v19 = vadd.f32 1.0, %v879_v29  ;;  %v896_v42 = vadd.f32 1.0, %v880_v52 }
  0xe1   :  { %v897_v8 = vadd.f32 1.0, %v881_v18  ;;  %v898_v37 = vadd.f32 1.0, %v882_v61  ;;  %v899_v20 = vadd.f32 1.0, %v883_v43  ;;  %v900_v51 = vadd.f32 1.0, %v884_v23 }
  0xe2   :  { %v1108_v16 = vmov 1966171168   ;;  %v919_v32 = vcombine.low %v885_v26, %v886_v24  ;;  %v920_v57 = vcombine.low %v887_v1, %v888_v9  ;;  %v921_v63 = vcombine.low %v889_v60, %v890_v2 }
  0xe3   :  { %v924_v11 = vunpack.c.l.s4 %v1108_v16  ;;  %v922_v62 = vcombine.low %v891_v40, %v892_v21  ;;  %v968_v49 = vcombine.low %v893_v39, %v894_v30  ;;  %v969_v12 = vcombine.low %v895_v19, %v896_v42 }
  0xe4   :  { %v970_v45 = vcombine.low %v897_v8, %v898_v37  ;;  %v971_v17 = vcombine.low %v899_v20, %v900_v51 }
  0xe5   :  { %v925_v4 = vunpack.c.0.s8 %v924_v11 }
  0xe7   :  { %v928_v38 = vsub.s32 %v925_v4, %v1800_v55 }
  0xe9   :  { %v929_v10 = vrot.slane %v919_v32, %v928_v38  ;;  %v936_v0 = vrot.slane %v920_v57, %v928_v38  ;;  %v943_v27 = vrot.slane %v921_v63, %v928_v38  ;;  %v950_v22 = vrot.slane %v922_v62, %v928_v38 }
  0xea   :  { %v978_v28 = vrot.slane %v968_v49, %v928_v38  ;;  %v985_v25 = vrot.slane %v969_v12, %v928_v38  ;;  %v992_v47 = vrot.slane %v970_v45, %v928_v38  ;;  %v999_v50 = vrot.slane %v971_v17, %v928_v38 }
  0xeb   :  { %v951_v13 = vcombine.low %v929_v10, %v936_v0  ;;  %v952_v34 = vcombine.low %v943_v27, %v950_v22 }
  0xec   :  { %v1000_v58 = vcombine.low %v978_v28, %v985_v25  ;;  %v1001_v5 = vcombine.low %v992_v47, %v999_v50 }
  0xed   :  { %v959_v15 = vrot.slane %v951_v13, %v928_v38  ;;  %v966_v31 = vrot.slane %v952_v34, %v928_v38 }
  0xee   :  { %v1008_v56 = vrot.slane %v1000_v58, %v928_v38  ;;  %v1015_v14 = vrot.slane %v1001_v5, %v928_v38 }
  0xef   :  { %v967_v46 = vcombine.low %v959_v15, %v966_v31 }
  0xf0   :  { %v1016_v54 = vcombine.low %v1008_v56, %v1015_v14 }
  0xf1   :  { %v1019_v44 = vmul.f32 %v967_v46, %v901_v6 }
  0xf2   :  { %v1020_v48 = vmul.f32 %v1016_v54, %v902_v36 }
  0xf3   :  { %1021 = vst [vmem:[%s1789_s2] sm:$0xff] %v1019_v44 }
  0xf4   :  { %1022 = vst [vmem:[%s1789_s2 + $0x8] sm:$0xff] %v1020_v48 }

</bundles_post_ra>
